<compile_context>
chip_gen: v6e
topology: v6e:2x2x1
jax: 0.10.0
libtpu: 0.0.40
codegen_flags: <defaults>
</compile_context>

<pallas_src>
import jax
import jax.numpy as jnp
from jax.experimental import pallas as pl
from jax.experimental.pallas import tpu as pltpu

IN_SIZE = 9
HIDDEN = 64
OUT_SIZE = 7
_SUBLANE = 16  # keep batch tiles multiples of 16 (covers f32/bf16 sublane packing)


def _round_up(n, m):
    return ((n + m - 1) // m) * m


def evalnet_kernel(x_ref, w1_ref, b1_ref, w2_ref, b2_ref, w3_ref, b3_ref, o_ref):
    # f1 -> ReLU  (bf16 MXU operands, f32 accumulation, f32 bias epilogue)
    x = x_ref[...].astype(jnp.bfloat16)
    h1 = jnp.dot(x, w1_ref[...], preferred_element_type=jnp.float32)
    h1 = jnp.maximum(h1 + b1_ref[...], 0.0)
    # f2 -> ReLU
    h2 = jnp.dot(h1.astype(jnp.bfloat16), w2_ref[...],
                 preferred_element_type=jnp.float32)
    h2 = jnp.maximum(h2 + b2_ref[...], 0.0)
    # f3 (no activation)
    out = jnp.dot(h2.astype(jnp.bfloat16), w3_ref[...],
                  preferred_element_type=jnp.float32)
    o_ref[...] = (out + b3_ref[...]).astype(o_ref.dtype)


def evalnet_forward(x, params, *, tile_b=512):
    """x: (B, IN_SIZE) float32. params: unpadded f32 dict from init_params."""
    B = x.shape[0]

    # --- batch tile selection -------------------------------------------------
    tile_b = min(int(tile_b), 8192)          # tiles stay tiny in VMEM anyway
    b_pad_min = _round_up(B, _SUBLANE)
    tile_b_eff = min(tile_b, b_pad_min)
    # Prefer >= 2 parallel grid steps (v7x megacore); harmless elsewhere.
    if pl.cdiv(b_pad_min, tile_b_eff) < 2 and b_pad_min >= 2 * _SUBLANE:
        tile_b_eff = _round_up(pl.cdiv(b_pad_min, 2), _SUBLANE)
    b_pad = _round_up(B, tile_b_eff)
    grid = (b_pad // tile_b_eff,)

    # --- operand preparation (batch pad only; weights -> bf16, biases f32) ----
    x_p = x if b_pad == B else jnp.pad(x, ((0, b_pad - B), (0, 0)))
    w1 = params["w1"].astype(jnp.bfloat16)   # (IN_SIZE, HIDDEN)
    w2 = params["w2"].astype(jnp.bfloat16)   # (HIDDEN, HIDDEN)
    w3 = params["w3"].astype(jnp.bfloat16)   # (HIDDEN, OUT_SIZE)
    b1 = params["b1"].astype(jnp.float32)    # (1, HIDDEN)
    b2 = params["b2"].astype(jnp.float32)    # (1, HIDDEN)
    b3 = params["b3"].astype(jnp.float32)    # (1, OUT_SIZE)

    # Scheduling hint for XLA around this small custom call.
    flops = 2 * b_pad * (IN_SIZE * HIDDEN + HIDDEN * HIDDEN + HIDDEN * OUT_SIZE)
    bytes_accessed = (x_p.size * 4 + b_pad * OUT_SIZE * 4
                      + (w1.size + w2.size + w3.size) * 2
                      + (b1.size + b2.size + b3.size) * 4)
    cost = pl.CostEstimate(flops=flops, transcendentals=0,
                           bytes_accessed=bytes_accessed)

    # Grid-invariant residents: constant index_map => fetched once, reused.
    resident = lambda shape: pl.BlockSpec(shape, lambda i: (0, 0))

    out_padded = pl.pallas_call(
        evalnet_kernel,
        out_shape=jax.ShapeDtypeStruct((b_pad, OUT_SIZE), jnp.float32),
        grid_spec=pl.GridSpec(
            grid=grid,
            in_specs=[
                pl.BlockSpec((tile_b_eff, IN_SIZE), lambda i: (i, 0)),  # x tile
                resident(w1.shape), resident(b1.shape),
                resident(w2.shape), resident(b2.shape),
                resident(w3.shape), resident(b3.shape),
            ],
            out_specs=pl.BlockSpec((tile_b_eff, OUT_SIZE), lambda i: (i, 0)),
        ),
        compiler_params=pltpu.CompilerParams(
            dimension_semantics=("parallel",),
        ),
        cost_estimate=cost,
    )(x_p, w1, b1, w2, b2, w3, b3)

    # Strip batch padding (features were never padded).
    return out_padded if b_pad == B else out_padded[:B]


def init_params(key):
    """Deterministic init matching nn.Linear shapes; weights stored transposed."""
    ks = jax.random.split(key, 6)

    def linear(kw, kb, fan_in, fan_out):
        bound = 1.0 / jnp.sqrt(fan_in)
        # PyTorch stores weight as (out, in); transpose to (in, out) for x @ W.
        w = jax.random.uniform(kw, (fan_out, fan_in), jnp.float32, -bound, bound).T
        b = jax.random.uniform(kb, (1, fan_out), jnp.float32, -bound, bound)
        return w, b

    w1, b1 = linear(ks[0], ks[1], IN_SIZE, HIDDEN)
    w2, b2 = linear(ks[2], ks[3], HIDDEN, HIDDEN)
    w3, b3 = linear(ks[4], ks[5], HIDDEN, OUT_SIZE)
    return {"w1": w1, "b1": b1, "w2": w2, "b2": b2, "w3": w3, "b3": b3}


def reference_forward(x, params):
    """Pure-JAX reference with the same bf16 operand rounding (f32 accumulate)."""
    r = lambda a: a.astype(jnp.bfloat16).astype(jnp.float32)
    h1 = jnp.maximum(r(x) @ r(params["w1"]) + params["b1"], 0.0)
    h2 = jnp.maximum(r(h1) @ r(params["w2"]) + params["b2"], 0.0)
    return r(h2) @ r(params["w3"]) + params["b3"]


if __name__ == "__main__":
    # TODO(synk): dropout_rate=None in the module default, so nn.Dropout is never
    # applied; no dropout is implemented here.
    key = jax.random.PRNGKey(0)
    k_param, k_x = jax.random.split(key)
    params = init_params(k_param)

    B = 64  # arbitrary B works (batch is padded to the tile size as needed)
    x = jax.random.normal(k_x, (B, IN_SIZE), dtype=jnp.float32)

    out = evalnet_forward(x, params)
    out = jax.block_until_ready(out)

    ref = reference_forward(x, params)
    assert out.shape == (B, OUT_SIZE)
    assert jnp.allclose(out, ref, atol=1e-2, rtol=1e-2), "mismatch vs JAX reference"
    print("KERNEL_OK")
</pallas_src>

<mosaic_0001>
module attributes {stable_mosaic.version = 11 : i64} {
  func.func @evalnet_kernel(%arg0: i32, %arg1: memref<32x9xf32, #tpu.memory_space<vmem>>, %arg2: memref<9x64xbf16, #tpu.memory_space<vmem>>, %arg3: memref<1x64xf32, #tpu.memory_space<vmem>>, %arg4: memref<64x64xbf16, #tpu.memory_space<vmem>>, %arg5: memref<1x64xf32, #tpu.memory_space<vmem>>, %arg6: memref<64x7xbf16, #tpu.memory_space<vmem>>, %arg7: memref<1x7xf32, #tpu.memory_space<vmem>>, %arg8: memref<32x7xf32, #tpu.memory_space<vmem>>) attributes {dimension_semantics = [#tpu.dimension_semantics<parallel>], iteration_bounds = array<i64: 2>, scalar_prefetch = 0 : i64, scratch_operands = 0 : i64, tpu.core_type = #tpu.core_type<tc>, window_params = [{transform_indices = @transform_0, window_bounds = array<i64: 32, 9>}, {pipeline_mode = #tpu.pipeline_mode<synchronous>, transform_indices = @transform_1, window_bounds = array<i64: 9, 64>}, {pipeline_mode = #tpu.pipeline_mode<synchronous>, transform_indices = @transform_2, window_bounds = array<i64: 1, 64>}, {pipeline_mode = #tpu.pipeline_mode<synchronous>, transform_indices = @transform_3, window_bounds = array<i64: 64, 64>}, {pipeline_mode = #tpu.pipeline_mode<synchronous>, transform_indices = @transform_4, window_bounds = array<i64: 1, 64>}, {pipeline_mode = #tpu.pipeline_mode<synchronous>, transform_indices = @transform_5, window_bounds = array<i64: 64, 7>}, {pipeline_mode = #tpu.pipeline_mode<synchronous>, transform_indices = @transform_6, window_bounds = array<i64: 1, 7>}, {transform_indices = @transform_7, window_bounds = array<i64: 32, 7>}]} {
    %c0 = arith.constant 0 : index
    %c0_0 = arith.constant 0 : index
    %0 = vector.load %arg1[%c0, %c0_0] : memref<32x9xf32, #tpu.memory_space<vmem>>, vector<32x9xf32>
    %1 = arith.truncf %0 : vector<32x9xf32> to vector<32x9xbf16>
    %c0_1 = arith.constant 0 : index
    %c0_2 = arith.constant 0 : index
    %2 = vector.load %arg2[%c0_1, %c0_2] : memref<9x64xbf16, #tpu.memory_space<vmem>>, vector<9x64xbf16>
    %cst = arith.constant dense<0.000000e+00> : vector<32x64xf32>
    %3 = tpu.matmul %1, %2, %cst {dimension_numbers = #tpu.dot_dimension_numbers<[1], [0], [0], [1], [0, 0, 1, 1], [], []>} : vector<32x9xbf16>, vector<9x64xbf16>, vector<32x64xf32> -> vector<32x64xf32>
    %c0_3 = arith.constant 0 : index
    %c0_4 = arith.constant 0 : index
    %4 = vector.load %arg3[%c0_3, %c0_4] : memref<1x64xf32, #tpu.memory_space<vmem>>, vector<1x64xf32>
    %5 = vector.broadcast %4 : vector<1x64xf32> to vector<32x64xf32>
    %6 = arith.addf %3, %5 : vector<32x64xf32>
    %cst_5 = arith.constant 0.000000e+00 : f32
    %7 = vector.broadcast %cst_5 : f32 to vector<32x64xf32>
    %8 = arith.maximumf %6, %7 : vector<32x64xf32>
    %9 = arith.truncf %8 : vector<32x64xf32> to vector<32x64xbf16>
    %c0_6 = arith.constant 0 : index
    %c0_7 = arith.constant 0 : index
    %10 = vector.load %arg4[%c0_6, %c0_7] : memref<64x64xbf16, #tpu.memory_space<vmem>>, vector<64x64xbf16>
    %cst_8 = arith.constant dense<0.000000e+00> : vector<32x64xf32>
    %11 = tpu.matmul %9, %10, %cst_8 {dimension_numbers = #tpu.dot_dimension_numbers<[1], [0], [0], [1], [0, 0, 1, 1], [], []>} : vector<32x64xbf16>, vector<64x64xbf16>, vector<32x64xf32> -> vector<32x64xf32>
    %c0_9 = arith.constant 0 : index
    %c0_10 = arith.constant 0 : index
    %12 = vector.load %arg5[%c0_9, %c0_10] : memref<1x64xf32, #tpu.memory_space<vmem>>, vector<1x64xf32>
    %13 = vector.broadcast %12 : vector<1x64xf32> to vector<32x64xf32>
    %14 = arith.addf %11, %13 : vector<32x64xf32>
    %cst_11 = arith.constant 0.000000e+00 : f32
    %15 = vector.broadcast %cst_11 : f32 to vector<32x64xf32>
    %16 = arith.maximumf %14, %15 : vector<32x64xf32>
    %17 = arith.truncf %16 : vector<32x64xf32> to vector<32x64xbf16>
    %c0_12 = arith.constant 0 : index
    %c0_13 = arith.constant 0 : index
    %18 = vector.load %arg6[%c0_12, %c0_13] : memref<64x7xbf16, #tpu.memory_space<vmem>>, vector<64x7xbf16>
    %cst_14 = arith.constant dense<0.000000e+00> : vector<32x7xf32>
    %19 = tpu.matmul %17, %18, %cst_14 {dimension_numbers = #tpu.dot_dimension_numbers<[1], [0], [0], [1], [0, 0, 1, 1], [], []>} : vector<32x64xbf16>, vector<64x7xbf16>, vector<32x7xf32> -> vector<32x7xf32>
    %c0_15 = arith.constant 0 : index
    %c0_16 = arith.constant 0 : index
    %20 = vector.load %arg7[%c0_15, %c0_16] : memref<1x7xf32, #tpu.memory_space<vmem>>, vector<1x7xf32>
    %21 = vector.broadcast %20 : vector<1x7xf32> to vector<32x7xf32>
    %22 = arith.addf %19, %21 : vector<32x7xf32>
    %c0_17 = arith.constant 0 : index
    %c0_18 = arith.constant 0 : index
    %23 = vector.load %arg8[%c0_17, %c0_18] : memref<32x7xf32, #tpu.memory_space<vmem>>, vector<32x7xf32>
    tpu.vector_store %arg8[%c0_17, %c0_18], %22 {strides = array<i32>} : memref<32x7xf32, #tpu.memory_space<vmem>>, vector<32x7xf32>,
    return
  }
  func.func @transform_0(%arg0: i32) -> (i32, i32) {
    %c0_i32 = arith.constant 0 : i32
    %c0_i32_0 = arith.constant 0 : i32
    return %arg0, %c0_i32 : i32, i32
  }
  func.func @transform_1(%arg0: i32) -> (i32, i32) {
    %c0_i32 = arith.constant 0 : i32
    %c0_i32_0 = arith.constant 0 : i32
    %c0_i32_1 = arith.constant 0 : i32
    return %c0_i32, %c0_i32_0 : i32, i32
  }
  func.func @transform_2(%arg0: i32) -> (i32, i32) {
    %c0_i32 = arith.constant 0 : i32
    %c0_i32_0 = arith.constant 0 : i32
    %c0_i32_1 = arith.constant 0 : i32
    return %c0_i32, %c0_i32_0 : i32, i32
  }
  func.func @transform_3(%arg0: i32) -> (i32, i32) {
    %c0_i32 = arith.constant 0 : i32
    %c0_i32_0 = arith.constant 0 : i32
    %c0_i32_1 = arith.constant 0 : i32
    return %c0_i32, %c0_i32_0 : i32, i32
  }
  func.func @transform_4(%arg0: i32) -> (i32, i32) {
    %c0_i32 = arith.constant 0 : i32
    %c0_i32_0 = arith.constant 0 : i32
    %c0_i32_1 = arith.constant 0 : i32
    return %c0_i32, %c0_i32_0 : i32, i32
  }
  func.func @transform_5(%arg0: i32) -> (i32, i32) {
    %c0_i32 = arith.constant 0 : i32
    %c0_i32_0 = arith.constant 0 : i32
    %c0_i32_1 = arith.constant 0 : i32
    return %c0_i32, %c0_i32_0 : i32, i32
  }
  func.func @transform_6(%arg0: i32) -> (i32, i32) {
    %c0_i32 = arith.constant 0 : i32
    %c0_i32_0 = arith.constant 0 : i32
    %c0_i32_1 = arith.constant 0 : i32
    return %c0_i32, %c0_i32_0 : i32, i32
  }
  func.func @transform_7(%arg0: i32) -> (i32, i32) {
    %c0_i32 = arith.constant 0 : i32
    %c0_i32_0 = arith.constant 0 : i32
    return %arg0, %c0_i32 : i32, i32
  }
}

</mosaic_0001>

<bundles_post_ra>
// kernel: tpu_custom_call.1
= control target key start
LH: loop header
LB: loop body
LE: loop exit
PB: predicated region body
PF: predicated region fallthrough
CT: control target
= control target key end

     0   :  { %s769_s24 = smov 0   ;;  %s833_s0 = inlined_call_operand.vmem [shape: f32[64,9], index: 0, kind: input, shape index: {}]   ;;  %s834_s1 = inlined_call_operand.vmem [shape: bf16[9,64], index: 1, kind: input, shape index: {}]   ;;  %s835_s2 = inlined_call_operand.vmem [shape: f32[1,64], index: 2, kind: input, shape index: {}]   ;;  %s836_s3 = inlined_call_operand.vmem [shape: bf16[64,64], index: 3, kind: input, shape index: {}]   ;;  %s837_s4 = inlined_call_operand.vmem [shape: f32[1,64], index: 4, kind: input, shape index: {}]   ;;  %s838_s5 = inlined_call_operand.vmem [shape: bf16[64,7], index: 5, kind: input, shape index: {}]   ;;  %s839_s6 = inlined_call_operand.vmem [shape: f32[1,7], index: 6, kind: input, shape index: {}]   ;;  %s840_s7 = inlined_call_operand.vmem [shape: f32[64,7], index: 7, kind: output, shape index: {}]  }
   0x1 LB: > { %s628_s25 = sadd.s32 4294967295, %s726_s24   ;;  %p632_p0 = scmp.ge.s32.totalorder %s726_s24, 1  ;;  %s726_s24 = sphi %s769_s24, %s17_s24  }
   0x2   : > { %p238_p1 = scmp.lt.s32.totalorder %s726_s24, 3 }
   0x4   : > { %p239_p2 = pnand %p632_p0, %p238_p1 }
   0x5   : > { %s633_s28 = sshll.u32 (!%p239_p2), %s628_s25, 2 }
   0x6   : > { %242 = sbr.rel (%p239_p2) target bundleno = 634 (0x27a), region = 48  ;;  %p271_p3 = scmp.lt.s32.totalorder (!%p239_p2), %s633_s28, 7 }
   0xb   : > { %v711_v0 = vld [vmem:[%s834_s1] sm:$0x1f]   ;;  %vm310_vm0 = vcmask 1043456   ;;  %vm311_vm1 = vcmask 1044480   ;;  %v712_v1 = vld [vmem:[%s836_s3 + $0x18] sm:$0xff]   ;;  %v728_v2 = vmov 65535  }
   0xc   : > { %v312_v3 = vsel %vm310_vm0, 4294967295, %v728_v2  ;;  %678 = vmatprep.subr.bf16.mxu1 %v712_v1  ;;  %s842_s28 = smov (!%p271_p3, %s633_s28), 7  ;;  %vm303_vm2 = vcmask 72704   ;;  %v713_v12 = vld [vmem:[%s836_s3 + $0x10] sm:$0xff]   ;;  %v714_v13 = vld [vmem:[%s836_s3 + $0x8] sm:$0xff]   ;;  %v715_v14 = vld [vmem:[%s836_s3] sm:$0xff]  }
   0xd   : > { %v313_v4 = vsel %vm311_vm1, %v312_v3, 0  ;;  %679 = vmatpush3.bf16.msra.mxu1 %v712_v1  ;;  %s634_s8 = sshll.u32 %s842_s28, 3  ;;  %v716_v15 = vld [vmem:[%s838_s5 + $0x18] sm:$0xff]   ;;  %v637_v18 = vld [vmem:[%s835_s2] ss:$0 sm:$0xff]  ;;  %vm411_vm3 = vcmask 523264  }
   0xe   : > { %v315_v5 = vand.u32 %v711_v0, %v313_v4  ;;  %s274_s11 = scalar_lea.vmem %s833_s0, %s634_s8  ;;  %680 = vmatprep.subr.bf16.mxu1 %v713_v12  ;;  %v717_v31 = vld [vmem:[%s838_s5 + $0x10] sm:$0xff]   ;;  %v718_v32 = vld [vmem:[%s838_s5 + $0x8] sm:$0xff]   ;;  %v719_v33 = vld [vmem:[%s838_s5] sm:$0xff]   ;;  %s280_s12 = scalar_lea.vmem %s840_s7, %s634_s8  ;;  %vm567_vm4 = vcmask 56320  }
   0xf   : > { %v283_v6 = vld [vmem:[%s274_s11] sm:$0xff]  ;;  %v284_v7 = vld [vmem:[%s274_s11 + $0x8] sm:$0xff]  ;;  %v285_v8 = vld [vmem:[%s274_s11 + $0x10] sm:$0xff] }
  0x10   : > { %672 = vmatprep.subr.bf16.mxu0 %v315_v5  ;;  %v287_v9 = vpack.c.bf16 %v284_v7, %v283_v6  ;;  %v286_v10 = vld [vmem:[%s274_s11 + $0x18] sm:$0xff]  ;;  %v641_v36 = vld [vmem:[%s837_s4] ss:$0 sm:$0xff] }
  0x11   : > { %673 = vmatpush3.bf16.msra.mxu0 %v315_v5  ;;  %v288_v11 = vpack.c.bf16 %v286_v10, %v285_v8  ;;  %681 = vmatpush3.bf16.msra.mxu1 %v713_v12  ;;  %v648_v50 = vld [vmem:[%s839_s6] ss:$0 sm:$0xff] }
  0x12   : > { %674 = vmatprep.mubr.msk.bf16.mxu0 %vm303_vm2, %v287_v9  ;;  %682 = vmatprep.subr.bf16.mxu1 %v714_v13 }
  0x13   : > { %690 = vmatprep.subr.bf16.mxu0 %v716_v15 }
  0x14   : > { %675 = vmatmul.mubr.msk.bf16.vlgmr.msra.gmra.mxu0 %vm303_vm2, %v288_v11 }
  0x15   : > { %683 = vmatpush3.bf16.msra.mxu1 %v714_v13  ;;  %691 = vmatpush3.bf16.msra.mxu0 %v716_v15 }
  0x16   : > { %684 = vmatprep.subr.bf16.mxu1 %v715_v14  ;;  %692 = vmatprep.subr.bf16.mxu0 %v717_v31 }
  0x19   : > { %685 = vmatpush3.bf16.msra.mxu1 %v715_v14  ;;  %693 = vmatpush3.bf16.msra.mxu0 %v717_v31 }
  0x1a   : > { %694 = vmatprep.subr.bf16.mxu0 %v718_v32 }
  0x1d   : > { %695 = vmatpush3.bf16.msra.mxu0 %v718_v32 }
  0x1e   : > { %696 = vmatprep.subr.bf16.mxu0 %v719_v33 }
  0x21   : > { %697 = vmatpush3.bf16.msra.mxu0 %v719_v33 }
  0xd4   : > { %v676_v16 = vpop.f32.mrf.mxu0 }
  0xd5   : > { %v360_v22 = vadd.f32 %v676_v16, %v637_v18 }
  0xd6   : > { %v351_v17 = vpop.f32.mrf.mxu0 }
  0xd7   : > { %v352_v20 = vadd.f32 %v637_v18, %v351_v17  ;;  %v368_v28 = vmax.f32 %v360_v22, 0.0 }
  0xd8   : > { %v677_v19 = vpop.f32.mrf.mxu0 }
  0xd9   : > { %v363_v21 = vadd.f32 %v677_v19, %v637_v18  ;;  %v366_v26 = vmax.f32 %v352_v20, 0.0 }
  0xda   : > { %v354_v23 = vpop.f32.mrf.mxu0 }
  0xdb   : > { %v355_v24 = vadd.f32 %v637_v18, %v354_v23  ;;  %v369_v25 = vmax.f32 %v363_v21, 0.0 }
  0xdd   : > { %v367_v27 = vmax.f32 %v355_v24, 0.0  ;;  %v371_v30 = vpack.c.bf16 %v369_v25, %v368_v28 }
  0xdf   : > { %v370_v29 = vpack.c.bf16 %v367_v27, %v366_v26 }
  0xe1   : > { %686 = vmatprep.mubr.msk.bf16.mxu1 %vm411_vm3, %v370_v29 }
  0xe2   : > { %687 = vmatmul.mubr.msk.bf16.vlgmr.msra.gmra.mxu1 %vm411_vm3, %v371_v30 }
 0x1a2   : > { %v688_v34 = vpop.f32.mrf.mxu1 }
 0x1a3   : > { %v461_v40 = vadd.f32 %v688_v34, %v641_v36 }
 0x1a4   : > { %v452_v35 = vpop.f32.mrf.mxu1 }
 0x1a5   : > { %v453_v38 = vadd.f32 %v641_v36, %v452_v35  ;;  %v469_v46 = vmax.f32 %v461_v40, 0.0 }
 0x1a6   : > { %v689_v37 = vpop.f32.mrf.mxu1 }
 0x1a7   : > { %v464_v39 = vadd.f32 %v689_v37, %v641_v36  ;;  %v467_v44 = vmax.f32 %v453_v38, 0.0 }
 0x1a8   : > { %v455_v41 = vpop.f32.mrf.mxu1 }
 0x1a9   : > { %v456_v42 = vadd.f32 %v641_v36, %v455_v41  ;;  %v470_v43 = vmax.f32 %v464_v39, 0.0 }
 0x1ab   : > { %v468_v45 = vmax.f32 %v456_v42, 0.0  ;;  %v472_v48 = vpack.c.bf16 %v470_v43, %v469_v46 }
 0x1ad   : > { %v471_v47 = vpack.c.bf16 %v468_v45, %v467_v44 }
 0x1af   : > { %698 = vmatprep.mubr.msk.bf16.mxu0 %vm411_vm3, %v471_v47 }
 0x1b0   : > { %699 = vmatmul.mubr.msk.bf16.vlgmr.msra.gmra.mxu0 %vm411_vm3, %v472_v48 }
 0x270   : > { %v700_v49 = vpop.f32.mrf.mxu0 }
 0x271   : > { %v561_v56 = vadd.f32 %v700_v49, %v648_v50 }
 0x272   : > { %v552_v51 = vpop.f32.mrf.mxu0 }
 0x273   : > { %v553_v52 = vadd.f32 %v648_v50, %v552_v51  ;;  %570 = vst.msk [vmem:[%s280_s12 + $0x10] sm:$0xff] %vm567_vm4, %v561_v56 }
 0x274   : > { %v701_v53 = vpop.f32.mrf.mxu0 }
 0x275   : > { %568 = vst.msk [vmem:[%s280_s12] sm:$0xff] %vm567_vm4, %v553_v52  ;;  %v564_v57 = vadd.f32 %v701_v53, %v648_v50 }
 0x276   : > { %v555_v54 = vpop.f32.mrf.mxu0 }
 0x277   : > { %v556_v55 = vadd.f32 %v648_v50, %v555_v54  ;;  %571 = vst.msk [vmem:[%s280_s12 + $0x18] sm:$0xff] %vm567_vm4, %v564_v57 }
 0x279   : > { %569 = vst.msk [vmem:[%s280_s12 + $0x8] sm:$0xff] %vm567_vm4, %v556_v55 }
 0x27a PF: > { %s17_s24 = sadd.s32 1, %s726_s24  }
 0x27b   : > { %p14_p4 = scmp.ge.s32.totalorder %s17_s24, 4  }
 0x27d   :  { %16 = sbr.rel (!%p14_p4) target bundleno = 1 (0x1), region = 78 }

</bundles_post_ra>
